<compile_context>
chip_gen: v5e
topology: v5e:2x2
jax: 0.10.0
libtpu: 0.0.40
codegen_flags: <defaults>
</compile_context>

<pallas_src>
import functools

import jax
import jax.numpy as jnp
from jax.experimental import pallas as pl
from jax.experimental.pallas import tpu as pltpu


def _round_up(n, m):
    return ((n + m - 1) // m) * m


def _policy_kernel(x_ref, w1_ref, b1_ref, wh_ref, bh_ref, out_ref, *, action_dim):
    x = x_ref[...]

    # fc1 + ReLU (hidden dim zero-padded to a lane-dense multiple of 128;
    # padded lanes stay exactly 0 after ReLU and contribute nothing downstream).
    h = jnp.dot(x, w1_ref[...], preferred_element_type=jnp.float32) + b1_ref[...]
    h = jnp.maximum(h, 0.0)

    # Fused heads: single MXU matmul producing [mu | std_pre | pad] lanes.
    s = jnp.dot(h, wh_ref[...], preferred_element_type=jnp.float32) + bh_ref[...]

    # Numerically stable softplus (matches torch.nn.functional.softplus, beta=1)
    # applied only to the non-mu lanes; padding lanes are sliced off in wrapper.
    sp = jnp.maximum(s, 0.0) + jnp.log1p(jnp.exp(-jnp.abs(s)))
    cols = jax.lax.broadcasted_iota(jnp.int32, s.shape, 1)
    out = jnp.where(cols < action_dim, s, sp)

    out_ref[...] = out.astype(out_ref.dtype)


def policy_net_continuous(x, params, *, block_batch=512):
    """Forward pass of PolicyNetContinuous. Returns (mu, std)."""
    w1, b1, wmu, bmu, wstd, bstd = params
    batch, state_dim = x.shape
    hidden_dim = w1.shape[1]
    action_dim = wmu.shape[1]

    # ---- parameter prep: fuse heads, zero-pad to lane-dense shapes ----
    hp = _round_up(hidden_dim, 128)            # padded hidden lanes
    oc = _round_up(2 * action_dim, 128)        # padded head-output lanes

    w1p = jnp.zeros((state_dim, hp), jnp.float32).at[:, :hidden_dim].set(w1)
    b1p = jnp.zeros((1, hp), jnp.float32).at[:, :hidden_dim].set(b1)

    wh = jnp.zeros((hp, oc), jnp.float32)
    wh = wh.at[:hidden_dim, :action_dim].set(wmu)
    wh = wh.at[:hidden_dim, action_dim:2 * action_dim].set(wstd)
    bh = jnp.zeros((1, oc), jnp.float32)
    bh = bh.at[:, :action_dim].set(bmu)
    bh = bh.at[:, action_dim:2 * action_dim].set(bstd)

    # ---- batch tiling (weights stay VMEM-resident across grid steps) ----
    tb = min(batch, block_batch)
    padded_batch = _round_up(batch, tb)
    xp = x.astype(jnp.float32)
    if padded_batch != batch:
        xp = jnp.zeros((padded_batch, state_dim), jnp.float32).at[:batch].set(xp)
    grid = (padded_batch // tb,)

    # TODO(synk): for very large RL-rollout batches on v6e/v7x, stream x (and
    # weights) in bf16 with f32 activation math to halve the dominant HBM bytes.

    flops = 2 * padded_batch * (state_dim * hp + hp * oc)
    bytes_accessed = 4 * (padded_batch * state_dim + state_dim * hp + hp +
                          hp * oc + oc + padded_batch * oc)

    out = pl.pallas_call(
        functools.partial(_policy_kernel, action_dim=action_dim),
        out_shape=jax.ShapeDtypeStruct((padded_batch, oc), jnp.float32),
        grid=grid,
        in_specs=[
            pl.BlockSpec((tb, state_dim), lambda i: (i, 0)),   # x: streamed
            pl.BlockSpec((state_dim, hp), lambda i: (0, 0)),   # w1: resident
            pl.BlockSpec((1, hp), lambda i: (0, 0)),           # b1: resident
            pl.BlockSpec((hp, oc), lambda i: (0, 0)),          # fused heads W
            pl.BlockSpec((1, oc), lambda i: (0, 0)),           # fused heads b
        ],
        out_specs=pl.BlockSpec((tb, oc), lambda i: (i, 0)),
        compiler_params=pltpu.CompilerParams(
            dimension_semantics=("parallel",)),
        cost_estimate=pl.CostEstimate(
            flops=flops,
            transcendentals=2 * padded_batch * oc,
            bytes_accessed=bytes_accessed),
    )(xp, w1p, b1p, wh, bh)

    mu = out[:batch, :action_dim]
    std = out[:batch, action_dim:2 * action_dim]
    return mu, std


def init_params(key, state_dim, hidden_dim, action_dim):
    """Deterministic init mimicking nn.Linear's uniform(-1/sqrt(in), 1/sqrt(in)).

    Weights stored transposed (in_features, out_features); biases as (1, out).
    """
    ks = jax.random.split(key, 6)

    def lin(kw, kb, fan_in, fan_out):
        bound = 1.0 / jnp.sqrt(jnp.float32(fan_in))
        w = jax.random.uniform(kw, (fan_in, fan_out), jnp.float32, -bound, bound)
        b = jax.random.uniform(kb, (1, fan_out), jnp.float32, -bound, bound)
        return w, b

    w1, b1 = lin(ks[0], ks[1], state_dim, hidden_dim)
    wmu, bmu = lin(ks[2], ks[3], hidden_dim, action_dim)
    wstd, bstd = lin(ks[4], ks[5], hidden_dim, action_dim)
    return (w1, b1, wmu, bmu, wstd, bstd)


def _reference(x, params):
    w1, b1, wmu, bmu, wstd, bstd = params
    h = jnp.maximum(x @ w1 + b1, 0.0)
    mu = h @ wmu + bmu
    s = h @ wstd + bstd
    std = jnp.maximum(s, 0.0) + jnp.log1p(jnp.exp(-jnp.abs(s)))
    return mu, std


if __name__ == "__main__":
    key = jax.random.PRNGKey(0)
    k_x, k_p, k_x2 = jax.random.split(key, 3)

    batch, state_dim, hidden_dim, action_dim = 8, 16, 32, 4

    x = jax.random.normal(k_x, (batch, state_dim), dtype=jnp.float32)
    params = init_params(k_p, state_dim, hidden_dim, action_dim)

    mu, std = policy_net_continuous(x, params)
    jax.block_until_ready((mu, std))

    mu_ref, std_ref = _reference(x, params)
    assert mu.shape == (batch, action_dim) and std.shape == (batch, action_dim)
    assert jnp.allclose(mu, mu_ref, atol=1e-5, rtol=1e-5)
    assert jnp.allclose(std, std_ref, atol=1e-5, rtol=1e-5)

    # Exercise multi-step grid + batch padding path (batch not a multiple of tile).
    batch2 = 20
    x2 = jax.random.normal(k_x2, (batch2, state_dim), dtype=jnp.float32)
    mu2, std2 = policy_net_continuous(x2, params, block_batch=8)
    jax.block_until_ready((mu2, std2))
    mu2_ref, std2_ref = _reference(x2, params)
    assert mu2.shape == (batch2, action_dim) and std2.shape == (batch2, action_dim)
    assert jnp.allclose(mu2, mu2_ref, atol=1e-5, rtol=1e-5)
    assert jnp.allclose(std2, std2_ref, atol=1e-5, rtol=1e-5)

    print("KERNEL_OK")
</pallas_src>

<mosaic_0001>
module attributes {stable_mosaic.version = 11 : i64} {
  func.func @_policy_kernel(%arg0: i32, %arg1: memref<8x16xf32, #tpu.memory_space<vmem>>, %arg2: memref<16x128xf32, #tpu.memory_space<vmem>>, %arg3: memref<1x128xf32, #tpu.memory_space<vmem>>, %arg4: memref<128x128xf32, #tpu.memory_space<vmem>>, %arg5: memref<1x128xf32, #tpu.memory_space<vmem>>, %arg6: memref<8x128xf32, #tpu.memory_space<vmem>>) attributes {dimension_semantics = [#tpu.dimension_semantics<parallel>], iteration_bounds = array<i64: 1>, scalar_prefetch = 0 : i64, scratch_operands = 0 : i64, tpu.core_type = #tpu.core_type<tc>, window_params = [{transform_indices = @transform_0, window_bounds = array<i64: 8, 16>}, {pipeline_mode = #tpu.pipeline_mode<synchronous>, transform_indices = @transform_1, window_bounds = array<i64: 16, 128>}, {pipeline_mode = #tpu.pipeline_mode<synchronous>, transform_indices = @transform_2, window_bounds = array<i64: 1, 128>}, {pipeline_mode = #tpu.pipeline_mode<synchronous>, transform_indices = @transform_3, window_bounds = array<i64: 128, 128>}, {pipeline_mode = #tpu.pipeline_mode<synchronous>, transform_indices = @transform_4, window_bounds = array<i64: 1, 128>}, {transform_indices = @transform_5, window_bounds = array<i64: 8, 128>}]} {
    %c0 = arith.constant 0 : index
    %c0_0 = arith.constant 0 : index
    %0 = vector.load %arg1[%c0, %c0_0] : memref<8x16xf32, #tpu.memory_space<vmem>>, vector<8x16xf32>
    %c0_1 = arith.constant 0 : index
    %c0_2 = arith.constant 0 : index
    %1 = vector.load %arg2[%c0_1, %c0_2] : memref<16x128xf32, #tpu.memory_space<vmem>>, vector<16x128xf32>
    %cst = arith.constant dense<0.000000e+00> : vector<8x128xf32>
    %2 = tpu.matmul %0, %1, %cst {dimension_numbers = #tpu.dot_dimension_numbers<[1], [0], [0], [1], [0, 0, 1, 1], [], []>} : vector<8x16xf32>, vector<16x128xf32>, vector<8x128xf32> -> vector<8x128xf32>
    %c0_3 = arith.constant 0 : index
    %c0_4 = arith.constant 0 : index
    %3 = vector.load %arg3[%c0_3, %c0_4] : memref<1x128xf32, #tpu.memory_space<vmem>>, vector<1x128xf32>
    %4 = vector.broadcast %3 : vector<1x128xf32> to vector<8x128xf32>
    %5 = arith.addf %2, %4 : vector<8x128xf32>
    %cst_5 = arith.constant 0.000000e+00 : f32
    %6 = vector.broadcast %cst_5 : f32 to vector<8x128xf32>
    %7 = arith.maximumf %5, %6 : vector<8x128xf32>
    %c0_6 = arith.constant 0 : index
    %c0_7 = arith.constant 0 : index
    %8 = vector.load %arg4[%c0_6, %c0_7] : memref<128x128xf32, #tpu.memory_space<vmem>>, vector<128x128xf32>
    %cst_8 = arith.constant dense<0.000000e+00> : vector<8x128xf32>
    %9 = tpu.matmul %7, %8, %cst_8 {dimension_numbers = #tpu.dot_dimension_numbers<[1], [0], [0], [1], [0, 0, 1, 1], [], []>} : vector<8x128xf32>, vector<128x128xf32>, vector<8x128xf32> -> vector<8x128xf32>
    %c0_9 = arith.constant 0 : index
    %c0_10 = arith.constant 0 : index
    %10 = vector.load %arg5[%c0_9, %c0_10] : memref<1x128xf32, #tpu.memory_space<vmem>>, vector<1x128xf32>
    %11 = vector.broadcast %10 : vector<1x128xf32> to vector<8x128xf32>
    %12 = arith.addf %9, %11 : vector<8x128xf32>
    %cst_11 = arith.constant 0.000000e+00 : f32
    %13 = vector.broadcast %cst_11 : f32 to vector<8x128xf32>
    %14 = arith.maximumf %12, %13 : vector<8x128xf32>
    %15 = math.absf %12 : vector<8x128xf32>
    %cst_12 = arith.constant 0.000000e+00 : f32
    %16 = vector.broadcast %cst_12 : f32 to vector<8x128xf32>
    %17 = arith.subf %16, %15 : vector<8x128xf32>
    %18 = math.exp %17 : vector<8x128xf32>
    %19 = math.log1p %18 : vector<8x128xf32>
    %20 = arith.addf %14, %19 : vector<8x128xf32>
    %21 = tpu.iota {dimensions = array<i32: 1>} : vector<8x128xi32>
    %c4_i32 = arith.constant 4 : i32
    %22 = vector.broadcast %c4_i32 : i32 to vector<8x128xi32>
    %23 = arith.cmpi slt, %21, %22 : vector<8x128xi32>
    %24 = arith.select %23, %12, %20 : vector<8x128xi1>, vector<8x128xf32>
    %c0_13 = arith.constant 0 : index
    %c0_14 = arith.constant 0 : index
    %25 = vector.load %arg6[%c0_13, %c0_14] : memref<8x128xf32, #tpu.memory_space<vmem>>, vector<8x128xf32>
    tpu.vector_store %arg6[%c0_13, %c0_14], %24 {strides = array<i32>} : memref<8x128xf32, #tpu.memory_space<vmem>>, vector<8x128xf32>,
    return
  }
  func.func @transform_0(%arg0: i32) -> (i32, i32) {
    %c0_i32 = arith.constant 0 : i32
    %c0_i32_0 = arith.constant 0 : i32
    return %arg0, %c0_i32 : i32, i32
  }
  func.func @transform_1(%arg0: i32) -> (i32, i32) {
    %c0_i32 = arith.constant 0 : i32
    %c0_i32_0 = arith.constant 0 : i32
    %c0_i32_1 = arith.constant 0 : i32
    return %c0_i32, %c0_i32_0 : i32, i32
  }
  func.func @transform_2(%arg0: i32) -> (i32, i32) {
    %c0_i32 = arith.constant 0 : i32
    %c0_i32_0 = arith.constant 0 : i32
    %c0_i32_1 = arith.constant 0 : i32
    return %c0_i32, %c0_i32_0 : i32, i32
  }
  func.func @transform_3(%arg0: i32) -> (i32, i32) {
    %c0_i32 = arith.constant 0 : i32
    %c0_i32_0 = arith.constant 0 : i32
    %c0_i32_1 = arith.constant 0 : i32
    return %c0_i32, %c0_i32_0 : i32, i32
  }
  func.func @transform_4(%arg0: i32) -> (i32, i32) {
    %c0_i32 = arith.constant 0 : i32
    %c0_i32_0 = arith.constant 0 : i32
    %c0_i32_1 = arith.constant 0 : i32
    return %c0_i32, %c0_i32_0 : i32, i32
  }
  func.func @transform_5(%arg0: i32) -> (i32, i32) {
    %c0_i32 = arith.constant 0 : i32
    %c0_i32_0 = arith.constant 0 : i32
    return %arg0, %c0_i32 : i32, i32
  }
}

</mosaic_0001>

<bundles_post_ra>
// kernel: tpu_custom_call.1
= control target key start
LH: loop header
LB: loop body
LE: loop exit
PB: predicated region body
PF: predicated region fallthrough
CT: control target
= control target key end

     0   :  { %10 = vsyncpa [#allocation3], 0  ;;  %s345_s0 = inlined_call_operand.hbm [shape: f32[8,16], index: 0, kind: input, shape index: {}]   ;;  %s346_s1 = inlined_call_operand.hbm [shape: f32[16,128], index: 1, kind: input, shape index: {}]   ;;  %s347_s2 = inlined_call_operand.vmem [shape: f32[1,128], index: 2, kind: input, shape index: {}]   ;;  %s348_s3 = inlined_call_operand.hbm [shape: f32[128,128], index: 3, kind: input, shape index: {}]   ;;  %s349_s4 = inlined_call_operand.vmem [shape: f32[1,128], index: 4, kind: input, shape index: {}]   ;;  %s350_s5 = inlined_call_operand.hbm [shape: f32[8,128], index: 5, kind: output, shape index: {}]  }
   0x1   :  { %11 = vsyncpa [#allocation6], 0  ;;  %s28_s20 = sshll.u32 %s346_s1, 4  ;;  %s29_s20 = int_to_ptr.hbm [resolvable:$true] %s28_s20 }
   0x2   :  { %12 = vsyncpa [#allocation4], 0  ;;  %s291_s21 = smov [#allocation5]   ;;  %s18_s25 = sshll.u32 %s345_s0, 4  ;;  %s19_s25 = int_to_ptr.hbm [resolvable:$true] %s18_s25 }
   0x3   :  { %s30_s22 = sshll.u32 %s291_s21, 4  ;;  %s292_s26 = smov 128   ;;  %s31_s22 = int_to_ptr.vmem [resolvable:$true] %s30_s22 }
   0x4   :  { %s293_s27 = smov 8   ;;  %s294_s28 = smov [#allocation2]  }
   0x5   :  { %36 = dma.hbm_to_vmem [thread:$0]  %s29_s20, 256, %s31_s22, [#allocation6], %s292_s26, %s292_s26, %s293_s27  }
   0x6   :  { %s20_s29 = sshll.u32 %s294_s28, 4  ;;  %s43_s7 = sshll.u32 %s348_s3, 4  ;;  %s21_s29 = int_to_ptr.vmem [resolvable:$true] %s20_s29  ;;  %s44_s7 = int_to_ptr.hbm [resolvable:$true] %s43_s7 }
   0x7   :  { %23 = dma.hbm_to_vmem [thread:$0]  %s19_s25, 128, %s21_s29, [#allocation3]  }
   0x8   :  { %s295_s1 = smov [#allocation7]  }
   0x9   :  { %s45_s8 = sshll.u32 %s295_s1, 4  ;;  %s46_s8 = int_to_ptr.vmem [resolvable:$true] %s45_s8 }
   0xa   :  { %51 = dma.hbm_to_vmem [thread:$0]  %s44_s7, 2048, %s46_s8, [#allocation6], %s292_s26, %s292_s26, %s293_s27  }
   0xb   :  { %285 = dma.done.wait [#allocation3], 128  }
   0xc   :  { %286 = vsyncadd [#allocation3], 4294967168 }
   0xd   :  { %287 = dma.done.wait [#allocation6], 2304  }
   0xe   :  { %288 = vsyncadd [#allocation6], 4294964992  ;;  %v68_v0 = vld [vmem:[#allocation5 + $0x8] sm:$0xff]  ;;  %v67_v1 = vld [vmem:[#allocation5] sm:$0xff]  ;;  %vm73_vm0 = vcmask 130048   ;;  %v153_v32 = vlaneseq  ;;  %s165_s13 = sshll.u32 %s350_s5, 4  ;;  %s166_s13 = int_to_ptr.hbm [resolvable:$true] %s165_s13 }
   0xf   :  { %91 = vmatpush.msra.mxu0 %v68_v0  ;;  %v66_v2 = vld [vmem:[#allocation2] sm:$0xff]  ;;  %v113_v3 = vld [vmem:[#allocation7 + $0x78] sm:$0xff]  ;;  %v112_v4 = vld [vmem:[#allocation7 + $0x70] sm:$0xff] }
  0x10   :  { %118 = vmatpush.msra.mxu1 %v113_v3  ;;  %v111_v5 = vld [vmem:[#allocation7 + $0x68] sm:$0xff]  ;;  %v110_v6 = vld [vmem:[#allocation7 + $0x60] sm:$0xff]  ;;  %v109_v7 = vld [vmem:[#allocation7 + $0x58] sm:$0xff]  ;;  %v154_v35 = vand.u32 127, %v153_v32 }
  0x11   :  { %92 = vmatpush.msra.mxu0 %v67_v1  ;;  %v108_v8 = vld [vmem:[#allocation7 + $0x50] sm:$0xff]  ;;  %v107_v9 = vld [vmem:[#allocation7 + $0x48] sm:$0xff]  ;;  %v106_v10 = vld [vmem:[#allocation7 + $0x40] sm:$0xff] }
  0x12   :  { %176 = vmatmul.msk.f32.vlgmr.msra.gmra.mxu0 %vm73_vm0, %v66_v2  ;;  %119 = vmatpush.msra.mxu1 %v112_v4  ;;  %v105_v11 = vld [vmem:[#allocation7 + $0x38] sm:$0xff]  ;;  %v104_v12 = vld [vmem:[#allocation7 + $0x30] sm:$0xff]  ;;  %v103_v13 = vld [vmem:[#allocation7 + $0x28] sm:$0xff]  ;;  %vm155_vm2 = vcmp.lt.s32.totalorder %v154_v35, 4 }
  0x13   :  { %v102_v14 = vld [vmem:[#allocation7 + $0x20] sm:$0xff]  ;;  %v101_v15 = vld [vmem:[#allocation7 + $0x18] sm:$0xff]  ;;  %v100_v16 = vld [vmem:[#allocation7 + $0x10] sm:$0xff] }
  0x14   :  { %120 = vmatpush.msra.mxu1 %v111_v5  ;;  %v99_v17 = vld [vmem:[#allocation7 + $0x8] sm:$0xff]  ;;  %v98_v18 = vld [vmem:[#allocation7] sm:$0xff] }
  0x15   :  { %v183_v19 = vld [vmem:[%s347_s2] ss:$0 sm:$0xff]  ;;  %s296_s2 = smov [#allocation8]  }
  0x16   :  { %121 = vmatpush.msra.mxu1 %v110_v6  ;;  %v184_v23 = vld [vmem:[%s349_s4] ss:$0 sm:$0xff]  ;;  %s163_s4 = sshll.u32 %s296_s2, 4  ;;  %s164_s4 = int_to_ptr.vmem [resolvable:$true] %s163_s4 }
  0x18   :  { %122 = vmatpush.msra.mxu1 %v109_v7 }
  0x1a   :  { %123 = vmatpush.msra.mxu1 %v108_v8 }
  0x1c   :  { %124 = vmatpush.msra.mxu1 %v107_v9 }
  0x1e   :  { %125 = vmatpush.msra.mxu1 %v106_v10 }
  0x20   :  { %126 = vmatpush.msra.mxu1 %v105_v11 }
  0x22   :  { %127 = vmatpush.msra.mxu1 %v104_v12 }
  0x24   :  { %128 = vmatpush.msra.mxu1 %v103_v13 }
  0x26   :  { %129 = vmatpush.msra.mxu1 %v102_v14 }
  0x28   :  { %130 = vmatpush.msra.mxu1 %v101_v15 }
  0x2a   :  { %131 = vmatpush.msra.mxu1 %v100_v16 }
  0x2c   :  { %132 = vmatpush.msra.mxu1 %v99_v17 }
  0x2e   :  { %133 = vmatpush.msra.mxu1 %v98_v18 }
  0x8f   :  { %v94_v20 = vpop.f32.mrf.mxu0 }
  0x90   :  { %v95_v21 = vadd.f32 %v183_v19, %v94_v20 }
  0x92   :  { %v97_v22 = vmax.f32 %v95_v21, 0.0 }
  0x94   :  { %134 = vmatmul.f32.vlgmr.msra.gmra.mxu1 %v97_v22 }
 0x111   :  { %v135_v24 = vpop.f32.mrf.mxu1 }
 0x112   :  { %v136_v25 = vadd.f32 %v184_v23, %v135_v24 }
 0x114   :  { %v139_v26 = vand.u32 2147483647, %v136_v25  ;;  %v138_v39 = vmax.f32 %v136_v25, 0.0 }
 0x116   :  { %v140_v27 = vsub.f32 0.0, %v139_v26 }
 0x118   :  { %v141_v28 = vmul.f32 1.442695, %v140_v27 }
 0x11a   :  { %185 = vpow2.f32 %v141_v28 }
 0x120   :  { %v186_v29 = vpop.eup %185 }
 0x121   :  { %v143_v30 = vadd.f32 1.0, %v186_v29  ;;  %v146_v31 = vmul.f32 -0.5, %v186_v29  ;;  %v149_v34 = vand.u32 2147483647, %v186_v29 }
 0x123   :  { %187 = vlog2.f32 %v143_v30  ;;  %v147_v33 = vadd.f32 1.0, %v146_v31  ;;  %vm150_vm1 = vcmp.lt.f32.partialorder %v149_v34, 0.0004427343 }
 0x125   :  { %v148_v38 = vmul.f32 %v186_v29, %v147_v33 }
 0x129   :  { %v188_v36 = vpop.eup %187 }
 0x12a   :  { %v145_v37 = vmul.f32 0.6931472, %v188_v36 }
 0x12c   :  { %v151_v40 = vsel %vm150_vm1, %v148_v38, %v145_v37 }
 0x12d   :  { %v152_v41 = vadd.f32 %v151_v40, %v138_v39 }
 0x12f   :  { %v156_v42 = vsel %vm155_vm2, %v136_v25, %v152_v41 }
 0x130   :  { %157 = vst [vmem:[#allocation8] sm:$0xff] %v156_v42 }
 0x131   :  { %168 = dma.vmem_to_hbm [thread:$0]  %s164_s4, 128, %s166_s13, [#allocation4]  }
 0x132   :  { %289 = dma.done.wait [#allocation4], 128  }
 0x133   :  { %290 = vsyncadd [#allocation4], 4294967168 }
 0x134   :  { %173 = vsyncpa [#allocation3], 1 }
 0x135   :  { %174 = vsyncpa [#allocation6], 1 }
 0x136   :  { %175 = vsyncpa [#allocation4], 1 }

</bundles_post_ra>
